<compile_context>
chip_gen: v6e
topology: v6e:2x2x1
jax: 0.10.0
libtpu: 0.0.40
codegen_flags: <defaults>
</compile_context>

<pallas_src>
import numpy as np
import jax
import jax.numpy as jnp
from jax.experimental import pallas as pl
from jax.experimental.pallas import tpu as pltpu


# Within-4-block lane shifts covering every off-diagonal (c, d) pair of the
# 4x4 generators (all diagonal entries are zero).
_SHIFTS = (1, -1, 2, -2, 3, -3)


# ----------------------------- Lorentz generators ---------------------------
def make_lorentz_gens() -> np.ndarray:
    gens = np.zeros((6, 4, 4), dtype=np.float32)
    sig = np.array([[0.0, -1.0], [1.0, 0.0]], dtype=np.float32)
    gens[0, [2, 2, 3, 3], [2, 3, 2, 3]] = sig.flatten()
    gens[1, [3, 3, 1, 1], [3, 1, 3, 1]] = sig.flatten()
    gens[2, [1, 1, 2, 2], [1, 2, 1, 2]] = sig.flatten()
    gens[3, [0, 0, 1, 1], [0, 1, 0, 1]] = np.abs(sig).flatten()
    gens[4, [0, 0, 2, 2], [0, 2, 0, 2]] = np.abs(sig).flatten()
    gens[5, [0, 0, 3, 3], [0, 3, 0, 3]] = np.abs(sig).flatten()
    return gens


def make_shift_masks(gens: np.ndarray, F: int) -> np.ndarray:
    """mask[s, 4n+c, a] = gens[a, c, c+k_s]  (0 if c+k_s leaves the 4-block)."""
    N = F // 4
    mask = np.zeros((len(_SHIFTS), F, 8), dtype=np.float32)  # lane-pad gens to 8 cols
    lanes = 4 * np.arange(N)
    for si, k in enumerate(_SHIFTS):
        for a in range(6):
            for c in range(4):
                d = c + k
                if 0 <= d < 4 and gens[a, c, d] != 0.0:
                    mask[si, lanes + c, a] = gens[a, c, d]
    return mask


# --------------------------------- kernel -----------------------------------
def lorentz_loss_kernel(x_ref, w1_ref, b1_ref, ut_ref, mask_ref, out_ref):
    x = x_ref[...]          # (TB, F)   pipelined batch tile
    w1 = w1_ref[...]        # (F, H)    resident across the grid
    b1 = b1_ref[...]        # (1, H)    resident
    ut = ut_ref[...]        # (H, F)    resident: (W1 * W2^T)^T, pre-folded in wrapper
    F = x.shape[1]

    # --- model forward (MXU) + analytic d(sum model)/dx = (1-h^2) @ U^T ---
    h = jnp.tanh(jnp.dot(x, w1, preferred_element_type=jnp.float32) + b1)     # (TB,H)
    grads = jnp.dot(1.0 - h * h, ut, preferred_element_type=jnp.float32)      # (TB,F)

    # --- Lorentz covariance penalty via lane rolls + tiny mask matmuls ---
    # dt[b,a] = sum_{n,c,d} gens[a,c,d] * x[b,4n+c] * grads[b,4n+d]
    dt = jnp.zeros((x.shape[0], 8), dtype=jnp.float32)
    for si, k in enumerate(_SHIFTS):
        rolled = pltpu.roll(grads, (-k) % F, axis=1)      # rolled[:, f] = grads[:, f+k]
        dt = dt + jnp.dot(x * rolled, mask_ref[si],
                          preferred_element_type=jnp.float32)                  # (TB,8)

    # per-tile, per-generator partial sum; final reduce + scale happen outside
    out_ref[0] = jnp.sum(dt * dt, axis=0, keepdims=True)                       # (1,8)


# -------------------------------- wrapper -----------------------------------
def lorentz_loss_pallas(x, w1, b1, w2, gens, *, tile_b=256):
    B, F = x.shape
    assert F % 4 == 0, "feature dim must pack four-vectors (F = 4*N)"
    H = w1.shape[1]

    # batch tile: multiple of 8 (f32 sublanes), capped by tile_b
    tb = min(int(tile_b), ((B + 7) // 8) * 8)
    tb = max(8, ((tb + 7) // 8) * 8)
    grid_b = pl.cdiv(B, tb)
    b_pad = grid_b * tb
    if b_pad != B:
        # zero rows give dt == 0 (dt is linear in x), so padding does not bias the loss
        x = jnp.pad(x, ((0, b_pad - B), (0, 0)))

    # Fold W2 into W1 once: grads = (1-h^2) @ U^T with U = W1 * W2^T (per-column scale)
    u_t = jnp.transpose(w1 * jnp.reshape(w2, (1, H)))                          # (H, F)
    mask = jnp.asarray(make_shift_masks(np.asarray(gens, dtype=np.float32), F))

    partials = pl.pallas_call(
        lorentz_loss_kernel,
        out_shape=jax.ShapeDtypeStruct((grid_b, 1, 8), jnp.float32),
        grid=(grid_b,),
        in_specs=[
            pl.BlockSpec((tb, F), lambda i: (i, 0)),                  # x: pipelined tiles
            pl.BlockSpec((F, H), lambda i: (0, 0)),                   # W1: resident
            pl.BlockSpec((1, H), lambda i: (0, 0)),                   # b1: resident
            pl.BlockSpec((H, F), lambda i: (0, 0)),                   # U^T: resident
            pl.BlockSpec((len(_SHIFTS), F, 8), lambda i: (0, 0, 0)),  # shift masks: resident
        ],
        out_specs=pl.BlockSpec((1, 1, 8), lambda i: (i, 0, 0)),
        compiler_params=pltpu.CompilerParams(
            dimension_semantics=("parallel",)),   # independent tile partials -> megacore-able
    )(x, w1, b1, u_t, mask)

    return 4.0 * jnp.sum(partials) / jnp.float32(B * F)


# ----------------------------- pure-JAX reference ---------------------------
def lorentz_loss_ref(x, w1, b1, w2, gens):
    def model(xx):
        return jnp.tanh(xx @ w1 + b1) @ w2                                     # (B, 1)

    grads = jax.grad(lambda xx: jnp.sum(model(xx)))(x)                         # (B, F)
    B, F = x.shape
    N = F // 4
    g = grads.reshape(B, N, 4)
    gg = jnp.einsum("acd,bnd->abnc", gens, g).reshape(6, B, F)
    dt = jnp.einsum("abm,bm->ab", gg, x)
    return 4.0 * jnp.sum(dt ** 2) / (B * F)


# ---------------------------------- main ------------------------------------
if __name__ == "__main__":
    B, N, H = 48, 32, 128          # F = 128: lane-dense; TB=32 -> 2 grid steps + padding path
    F = 4 * N

    key = jax.random.PRNGKey(0)
    kx, kw1, kb1, kw2 = jax.random.split(key, 4)
    x = jax.random.normal(kx, (B, F), dtype=jnp.float32)
    w1 = jax.random.normal(kw1, (F, H), dtype=jnp.float32) * 0.1
    b1 = jax.random.normal(kb1, (1, H), dtype=jnp.float32) * 0.1
    w2 = jax.random.normal(kw2, (H, 1), dtype=jnp.float32) * 0.2

    gens = jnp.asarray(make_lorentz_gens())

    loss = jax.block_until_ready(lorentz_loss_pallas(x, w1, b1, w2, gens, tile_b=32))
    ref = jax.block_until_ready(lorentz_loss_ref(x, w1, b1, w2, gens))
    np.testing.assert_allclose(np.asarray(loss), np.asarray(ref), rtol=1e-3, atol=1e-6)

    print("KERNEL_OK")
</pallas_src>

<mosaic_0001>
module attributes {stable_mosaic.version = 11 : i64} {
  func.func @lorentz_loss_kernel(%arg0: i32, %arg1: memref<32x128xf32, #tpu.memory_space<vmem>>, %arg2: memref<128x128xf32, #tpu.memory_space<vmem>>, %arg3: memref<1x128xf32, #tpu.memory_space<vmem>>, %arg4: memref<128x128xf32, #tpu.memory_space<vmem>>, %arg5: memref<6x128x8xf32, #tpu.memory_space<vmem>>, %arg6: memref<1x1x8xf32, #tpu.memory_space<vmem>>) attributes {dimension_semantics = [#tpu.dimension_semantics<parallel>], iteration_bounds = array<i64: 2>, scalar_prefetch = 0 : i64, scratch_operands = 0 : i64, tpu.core_type = #tpu.core_type<tc>, window_params = [{transform_indices = @transform_0, window_bounds = array<i64: 32, 128>}, {pipeline_mode = #tpu.pipeline_mode<synchronous>, transform_indices = @transform_1, window_bounds = array<i64: 128, 128>}, {pipeline_mode = #tpu.pipeline_mode<synchronous>, transform_indices = @transform_2, window_bounds = array<i64: 1, 128>}, {pipeline_mode = #tpu.pipeline_mode<synchronous>, transform_indices = @transform_3, window_bounds = array<i64: 128, 128>}, {pipeline_mode = #tpu.pipeline_mode<synchronous>, transform_indices = @transform_4, window_bounds = array<i64: 6, 128, 8>}, {transform_indices = @transform_5, window_bounds = array<i64: 1, 1, 8>}]} {
    %c0 = arith.constant 0 : index
    %c0_0 = arith.constant 0 : index
    %0 = vector.load %arg1[%c0, %c0_0] : memref<32x128xf32, #tpu.memory_space<vmem>>, vector<32x128xf32>
    %c0_1 = arith.constant 0 : index
    %c0_2 = arith.constant 0 : index
    %1 = vector.load %arg2[%c0_1, %c0_2] : memref<128x128xf32, #tpu.memory_space<vmem>>, vector<128x128xf32>
    %c0_3 = arith.constant 0 : index
    %c0_4 = arith.constant 0 : index
    %2 = vector.load %arg3[%c0_3, %c0_4] : memref<1x128xf32, #tpu.memory_space<vmem>>, vector<1x128xf32>
    %c0_5 = arith.constant 0 : index
    %c0_6 = arith.constant 0 : index
    %3 = vector.load %arg4[%c0_5, %c0_6] : memref<128x128xf32, #tpu.memory_space<vmem>>, vector<128x128xf32>
    %cst = arith.constant dense<0.000000e+00> : vector<32x128xf32>
    %4 = tpu.matmul %0, %1, %cst {dimension_numbers = #tpu.dot_dimension_numbers<[1], [0], [0], [1], [0, 0, 1, 1], [], []>} : vector<32x128xf32>, vector<128x128xf32>, vector<32x128xf32> -> vector<32x128xf32>
    %5 = vector.broadcast %2 : vector<1x128xf32> to vector<32x128xf32>
    %6 = arith.addf %4, %5 : vector<32x128xf32>
    %7 = math.tanh %6 : vector<32x128xf32>
    %8 = arith.mulf %7, %7 : vector<32x128xf32>
    %cst_7 = arith.constant 1.000000e+00 : f32
    %9 = vector.broadcast %cst_7 : f32 to vector<32x128xf32>
    %10 = arith.subf %9, %8 : vector<32x128xf32>
    %cst_8 = arith.constant dense<0.000000e+00> : vector<32x128xf32>
    %11 = tpu.matmul %10, %3, %cst_8 {dimension_numbers = #tpu.dot_dimension_numbers<[1], [0], [0], [1], [0, 0, 1, 1], [], []>} : vector<32x128xf32>, vector<128x128xf32>, vector<32x128xf32> -> vector<32x128xf32>
    %cst_9 = arith.constant 0.000000e+00 : f32
    %12 = vector.broadcast %cst_9 : f32 to vector<32x8xf32>
    %c127_i32 = arith.constant 127 : i32
    %13 = tpu.dynamic_rotate %11 by %c127_i32 dim 1 : vector<32x128xf32>, i32 -> vector<32x128xf32>
    %14 = arith.mulf %0, %13 : vector<32x128xf32>
    %c0_10 = arith.constant 0 : index
    %c0_11 = arith.constant 0 : index
    %c0_12 = arith.constant 0 : index
    %15 = vector.load %arg5[%c0_10, %c0_11, %c0_12] : memref<6x128x8xf32, #tpu.memory_space<vmem>>, vector<1x128x8xf32>
    %16 = vector.shape_cast %15 : vector<1x128x8xf32> to vector<128x8xf32>
    %cst_13 = arith.constant dense<0.000000e+00> : vector<32x8xf32>
    %17 = tpu.matmul %14, %16, %cst_13 {dimension_numbers = #tpu.dot_dimension_numbers<[1], [0], [0], [1], [0, 0, 1, 1], [], []>} : vector<32x128xf32>, vector<128x8xf32>, vector<32x8xf32> -> vector<32x8xf32>
    %18 = arith.addf %12, %17 : vector<32x8xf32>
    %c1_i32 = arith.constant 1 : i32
    %19 = tpu.dynamic_rotate %11 by %c1_i32 dim 1 : vector<32x128xf32>, i32 -> vector<32x128xf32>
    %20 = arith.mulf %0, %19 : vector<32x128xf32>
    %c1 = arith.constant 1 : index
    %c0_14 = arith.constant 0 : index
    %c0_15 = arith.constant 0 : index
    %21 = vector.load %arg5[%c1, %c0_14, %c0_15] : memref<6x128x8xf32, #tpu.memory_space<vmem>>, vector<1x128x8xf32>
    %22 = vector.shape_cast %21 : vector<1x128x8xf32> to vector<128x8xf32>
    %cst_16 = arith.constant dense<0.000000e+00> : vector<32x8xf32>
    %23 = tpu.matmul %20, %22, %cst_16 {dimension_numbers = #tpu.dot_dimension_numbers<[1], [0], [0], [1], [0, 0, 1, 1], [], []>} : vector<32x128xf32>, vector<128x8xf32>, vector<32x8xf32> -> vector<32x8xf32>
    %24 = arith.addf %18, %23 : vector<32x8xf32>
    %c126_i32 = arith.constant 126 : i32
    %25 = tpu.dynamic_rotate %11 by %c126_i32 dim 1 : vector<32x128xf32>, i32 -> vector<32x128xf32>
    %26 = arith.mulf %0, %25 : vector<32x128xf32>
    %c2 = arith.constant 2 : index
    %c0_17 = arith.constant 0 : index
    %c0_18 = arith.constant 0 : index
    %27 = vector.load %arg5[%c2, %c0_17, %c0_18] : memref<6x128x8xf32, #tpu.memory_space<vmem>>, vector<1x128x8xf32>
    %28 = vector.shape_cast %27 : vector<1x128x8xf32> to vector<128x8xf32>
    %cst_19 = arith.constant dense<0.000000e+00> : vector<32x8xf32>
    %29 = tpu.matmul %26, %28, %cst_19 {dimension_numbers = #tpu.dot_dimension_numbers<[1], [0], [0], [1], [0, 0, 1, 1], [], []>} : vector<32x128xf32>, vector<128x8xf32>, vector<32x8xf32> -> vector<32x8xf32>
    %30 = arith.addf %24, %29 : vector<32x8xf32>
    %c2_i32 = arith.constant 2 : i32
    %31 = tpu.dynamic_rotate %11 by %c2_i32 dim 1 : vector<32x128xf32>, i32 -> vector<32x128xf32>
    %32 = arith.mulf %0, %31 : vector<32x128xf32>
    %c3 = arith.constant 3 : index
    %c0_20 = arith.constant 0 : index
    %c0_21 = arith.constant 0 : index
    %33 = vector.load %arg5[%c3, %c0_20, %c0_21] : memref<6x128x8xf32, #tpu.memory_space<vmem>>, vector<1x128x8xf32>
    %34 = vector.shape_cast %33 : vector<1x128x8xf32> to vector<128x8xf32>
    %cst_22 = arith.constant dense<0.000000e+00> : vector<32x8xf32>
    %35 = tpu.matmul %32, %34, %cst_22 {dimension_numbers = #tpu.dot_dimension_numbers<[1], [0], [0], [1], [0, 0, 1, 1], [], []>} : vector<32x128xf32>, vector<128x8xf32>, vector<32x8xf32> -> vector<32x8xf32>
    %36 = arith.addf %30, %35 : vector<32x8xf32>
    %c125_i32 = arith.constant 125 : i32
    %37 = tpu.dynamic_rotate %11 by %c125_i32 dim 1 : vector<32x128xf32>, i32 -> vector<32x128xf32>
    %38 = arith.mulf %0, %37 : vector<32x128xf32>
    %c4 = arith.constant 4 : index
    %c0_23 = arith.constant 0 : index
    %c0_24 = arith.constant 0 : index
    %39 = vector.load %arg5[%c4, %c0_23, %c0_24] : memref<6x128x8xf32, #tpu.memory_space<vmem>>, vector<1x128x8xf32>
    %40 = vector.shape_cast %39 : vector<1x128x8xf32> to vector<128x8xf32>
    %cst_25 = arith.constant dense<0.000000e+00> : vector<32x8xf32>
    %41 = tpu.matmul %38, %40, %cst_25 {dimension_numbers = #tpu.dot_dimension_numbers<[1], [0], [0], [1], [0, 0, 1, 1], [], []>} : vector<32x128xf32>, vector<128x8xf32>, vector<32x8xf32> -> vector<32x8xf32>
    %42 = arith.addf %36, %41 : vector<32x8xf32>
    %c3_i32 = arith.constant 3 : i32
    %43 = tpu.dynamic_rotate %11 by %c3_i32 dim 1 : vector<32x128xf32>, i32 -> vector<32x128xf32>
    %44 = arith.mulf %0, %43 : vector<32x128xf32>
    %c5 = arith.constant 5 : index
    %c0_26 = arith.constant 0 : index
    %c0_27 = arith.constant 0 : index
    %45 = vector.load %arg5[%c5, %c0_26, %c0_27] : memref<6x128x8xf32, #tpu.memory_space<vmem>>, vector<1x128x8xf32>
    %46 = vector.shape_cast %45 : vector<1x128x8xf32> to vector<128x8xf32>
    %cst_28 = arith.constant dense<0.000000e+00> : vector<32x8xf32>
    %47 = tpu.matmul %44, %46, %cst_28 {dimension_numbers = #tpu.dot_dimension_numbers<[1], [0], [0], [1], [0, 0, 1, 1], [], []>} : vector<32x128xf32>, vector<128x8xf32>, vector<32x8xf32> -> vector<32x8xf32>
    %48 = arith.addf %42, %47 : vector<32x8xf32>
    %49 = arith.mulf %48, %48 : vector<32x8xf32>
    %cst_29 = arith.constant dense<0.000000e+00> : vector<8xf32>
    %50 = vector.multi_reduction <add>, %49, %cst_29 [0] : vector<32x8xf32> to vector<8xf32>
    %51 = vector.shape_cast %50 : vector<8xf32> to vector<1x8xf32>
    %c0_30 = arith.constant 0 : index
    %c0_31 = arith.constant 0 : index
    %c0_32 = arith.constant 0 : index
    %52 = vector.load %arg6[%c0_30, %c0_31, %c0_32] : memref<1x1x8xf32, #tpu.memory_space<vmem>>, vector<1x1x8xf32>
    %53 = vector.shape_cast %52 : vector<1x1x8xf32> to vector<1x8xf32>
    %54 = vector.shape_cast %51 : vector<1x8xf32> to vector<1x1x8xf32>
    tpu.vector_store %arg6[%c0_30, %c0_31, %c0_32], %54 {strides = array<i32>} : memref<1x1x8xf32, #tpu.memory_space<vmem>>, vector<1x1x8xf32>,
    return
  }
  func.func @transform_0(%arg0: i32) -> (i32, i32) {
    %c0_i32 = arith.constant 0 : i32
    %c0_i32_0 = arith.constant 0 : i32
    return %arg0, %c0_i32 : i32, i32
  }
  func.func @transform_1(%arg0: i32) -> (i32, i32) {
    %c0_i32 = arith.constant 0 : i32
    %c0_i32_0 = arith.constant 0 : i32
    %c0_i32_1 = arith.constant 0 : i32
    return %c0_i32, %c0_i32_0 : i32, i32
  }
  func.func @transform_2(%arg0: i32) -> (i32, i32) {
    %c0_i32 = arith.constant 0 : i32
    %c0_i32_0 = arith.constant 0 : i32
    %c0_i32_1 = arith.constant 0 : i32
    return %c0_i32, %c0_i32_0 : i32, i32
  }
  func.func @transform_3(%arg0: i32) -> (i32, i32) {
    %c0_i32 = arith.constant 0 : i32
    %c0_i32_0 = arith.constant 0 : i32
    %c0_i32_1 = arith.constant 0 : i32
    return %c0_i32, %c0_i32_0 : i32, i32
  }
  func.func @transform_4(%arg0: i32) -> (i32, i32, i32) {
    %c0_i32 = arith.constant 0 : i32
    %c0_i32_0 = arith.constant 0 : i32
    %c0_i32_1 = arith.constant 0 : i32
    %c0_i32_2 = arith.constant 0 : i32
    return %c0_i32, %c0_i32_0, %c0_i32_1 : i32, i32, i32
  }
  func.func @transform_5(%arg0: i32) -> (i32, i32, i32) {
    %c0_i32 = arith.constant 0 : i32
    %c0_i32_0 = arith.constant 0 : i32
    %c0_i32_1 = arith.constant 0 : i32
    return %arg0, %c0_i32, %c0_i32_0 : i32, i32, i32
  }
}

</mosaic_0001>

<bundles_post_ra>
// kernel: tpu_custom_call.1
= control target key start
LH: loop header
LB: loop body
LE: loop exit
PB: predicated region body
PF: predicated region fallthrough
CT: control target
= control target key end

     0   :  { %10 = vsyncpa [#allocation3], 0  ;;  %s2466_s0 = inlined_call_operand.vmem [shape: f32[64,128], index: 0, kind: input, shape index: {}]   ;;  %s2467_s1 = inlined_call_operand.vmem [shape: f32[128,128], index: 1, kind: input, shape index: {}]   ;;  %s2468_s2 = inlined_call_operand.vmem [shape: f32[1,128], index: 2, kind: input, shape index: {}]   ;;  %s2469_s3 = inlined_call_operand.vmem [shape: f32[128,128], index: 3, kind: input, shape index: {}]   ;;  %s2470_s4 = inlined_call_operand.vmem [shape: f32[6,128,8], index: 4, kind: input, shape index: {}]   ;;  %s2471_s5 = inlined_call_operand.hbm [shape: f32[2,1,8], index: 5, kind: output, shape index: {}]  }
   0x1   :  { %12 = vsyncpa [#allocation3 + $0x1], 0  ;;  %s1942_s18 = smov 0   ;;  %s1944_s19 = smov 0  }
   0x2   :  { %s1946_s20 = smov 0   ;;  %s1948_s21 = smov 0  }
   0x3 LB: > { %s1963_s22 = sadd.s32 4294967295, %s1903_s21   ;;  %s1236_s23 = sadd.s32 4294967294, %s1903_s21   ;;  %s1903_s21 = sphi %s1948_s21, %s2477_s21   ;;  %s1899_s20 = sphi %s1946_s20, %s2476_s20   ;;  %s1895_s19 = sphi %s1944_s19, %s2475_s19   ;;  %s1891_s18 = sphi %s1942_s18, %s2474_s18  }
   0x4   : > { %s1967_s24 = sadd.s32 1, %s1903_s21   ;;  %s135_s25 = sadd.s32 1, %s1899_s20 }
   0x5   : > { %s132_s26 = ssub.s32 %s1903_s21, %s1967_s24  ;;  %p145_p0 = scmp.ne.s32.totalorder %s1899_s20, %s1895_s19 }
   0x6   : > { %p133_p1 = scmp.eq.s32.totalorder %s132_s26, 0  ;;  %p146_p2 = scmp.eq.s32.totalorder %s1963_s22, 1 }
   0x7   : > { %p151_p3 = scmp.ne.s32.totalorder %s1895_s19, %s1891_s18  ;;  %p152_p4 = scmp.eq.s32.totalorder %s1236_s23, 1 }
   0x8   : > { %s1978_s27 = scalar_select %p133_p1, %s1899_s20, %s135_s25  }
   0x9   : > { %p1980_p5 = por %p146_p2, %p145_p0  ;;  %p1984_p6 = por %p152_p4, %p151_p3 }
   0xa   : > { %p1239_p7 = scmp.ge.s32.totalorder %s1903_s21, 1  ;;  %p191_p8 = scmp.lt.s32.totalorder %s1903_s21, 3 }
   0xc   : > { %p192_p9 = pnand %p1239_p7, %p191_p8 }
   0xd   : > { %s1240_s9 = sshll.u32 (!%p192_p9), %s1963_s22, 2  ;;  %s1905_s17 = smov (!%p192_p9), 127  }
   0xe   : > { %195 = sbr.rel (%p192_p9) target bundleno = 890 (0x37a), region = 40  ;;  %p219_p10 = scmp.lt.s32.totalorder (!%p192_p9), %s1240_s9, 7 }
   0xf   : > { %s1906_s23 = smov (!%p192_p9), 1   ;;  %s1907_s25 = smov (!%p192_p9), 126  }
  0x10   : > { %s1908_s26 = smov (!%p192_p9), 2   ;;  %s1909_s6 = smov (!%p192_p9), 125  }
  0x11   : > { %s1910_s7 = smov (!%p192_p9), 3   ;;  %s1911_s12 = smov (!%p192_p9), [#allocation2]  }
  0x12   : > { %s1847_s13 = sshll.u32 (!%p192_p9), %s1911_s12, 4  ;;  %s1848_s13 = int_to_ptr.vmem [resolvable:$false] %s1847_s13 }
  0x13   : > { %v243_v0 = vld [vmem:[%s2467_s1 + $0x78] sm:$0xff]  ;;  %v242_v1 = vld [vmem:[%s2467_s1 + $0x70] sm:$0xff]  ;;  %v241_v2 = vld [vmem:[%s2467_s1 + $0x68] sm:$0xff]  ;;  %s2479_s9 = smov (!%p219_p10, %s1240_s9), 7  ;;  %vm1152_vm0 = vcmask 64512   ;;  %vm1166_vm1 = vcmask 57344  }
  0x14   : > { %1486 = vmatprep.subr.mxu0 %v243_v0  ;;  %v240_v3 = vld [vmem:[%s2467_s1 + $0x60] sm:$0xff]  ;;  %s1241_s14 = sshll.u32 %s2479_s9, 3  ;;  %v260_v4 = vld [vmem:[%s2469_s3 + $0x78] sm:$0xff]  ;;  %v259_v6 = vld [vmem:[%s2469_s3 + $0x70] sm:$0xff] }
  0x15   : > { %1487 = vmatpush3.msra.mxu0 %v243_v0  ;;  %v239_v5 = vld [vmem:[%s2467_s1 + $0x58] sm:$0xff]  ;;  %s2012_s30 = scalar_lea.vmem %s2466_s0, %s1241_s14  ;;  %1524 = vmatprep.subr.mxu1 %v260_v4  ;;  %v238_v8 = vld [vmem:[%s2467_s1 + $0x50] sm:$0xff]  ;;  %v258_v9 = vld [vmem:[%s2469_s3 + $0x68] sm:$0xff] }
  0x16   : > { %1488 = vmatprep.subr.mxu0 %v242_v1  ;;  %v2018_v7 = vld [vmem:[%s2012_s30] sm:$0xff]  ;;  %1525 = vmatpush3.msra.mxu1 %v260_v4  ;;  %v237_v10 = vld [vmem:[%s2467_s1 + $0x48] sm:$0xff]  ;;  %v235_v13 = vld [vmem:[%s2467_s1 + $0x38] sm:$0xff] }
  0x17   : > { %1489 = vmatpush3.msra.mxu0 %v242_v1  ;;  %1518 = vmatprep.mubr.f32.mxu0 %v2018_v7  ;;  %v257_v11 = vld [vmem:[%s2469_s3 + $0x60] sm:$0xff]  ;;  %v234_v14 = vld [vmem:[%s2467_s1 + $0x30] sm:$0xff]  ;;  %v233_v15 = vld [vmem:[%s2467_s1 + $0x28] sm:$0xff] }
  0x18   : > { %1490 = vmatprep.subr.mxu0 %v241_v2  ;;  %1526 = vmatprep.subr.mxu1 %v259_v6  ;;  %v236_v12 = vld [vmem:[%s2467_s1 + $0x40] sm:$0xff]  ;;  %v231_v17 = vld [vmem:[%s2467_s1 + $0x18] sm:$0xff]  ;;  %v230_v18 = vld [vmem:[%s2467_s1 + $0x10] sm:$0xff] }
  0x19   : > { %1491 = vmatpush3.msra.mxu0 %v241_v2  ;;  %1527 = vmatpush3.msra.mxu1 %v259_v6  ;;  %v232_v16 = vld [vmem:[%s2467_s1 + $0x20] sm:$0xff]  ;;  %v229_v19 = vld [vmem:[%s2467_s1 + $0x8] sm:$0xff]  ;;  %v2064_v22 = vld [vmem:[%s2012_s30 + $0x10] sm:$0xff] }
  0x1a   : > { %1492 = vmatprep.subr.mxu0 %v240_v3  ;;  %1528 = vmatprep.subr.mxu1 %v258_v9  ;;  %v228_v20 = vld [vmem:[%s2467_s1] sm:$0xff]  ;;  %v2061_v21 = vld [vmem:[%s2012_s30 + $0x8] sm:$0xff]  ;;  %v2069_v23 = vld [vmem:[%s2012_s30 + $0x18] sm:$0xff] }
  0x1b   : > { %1493 = vmatpush3.msra.mxu0 %v240_v3  ;;  %1529 = vmatpush3.msra.mxu1 %v258_v9  ;;  %v256_v24 = vld [vmem:[%s2469_s3 + $0x58] sm:$0xff]  ;;  %v255_v25 = vld [vmem:[%s2469_s3 + $0x50] sm:$0xff]  ;;  %v254_v26 = vld [vmem:[%s2469_s3 + $0x48] sm:$0xff] }
  0x1c   : > { %1494 = vmatprep.subr.mxu0 %v239_v5  ;;  %1530 = vmatprep.subr.mxu1 %v257_v11  ;;  %v253_v27 = vld [vmem:[%s2469_s3 + $0x40] sm:$0xff]  ;;  %v252_v28 = vld [vmem:[%s2469_s3 + $0x38] sm:$0xff]  ;;  %v251_v29 = vld [vmem:[%s2469_s3 + $0x30] sm:$0xff] }
  0x1d   : > { %1495 = vmatpush3.msra.mxu0 %v239_v5  ;;  %1531 = vmatpush3.msra.mxu1 %v257_v11  ;;  %v250_v30 = vld [vmem:[%s2469_s3 + $0x28] sm:$0xff]  ;;  %v249_v31 = vld [vmem:[%s2469_s3 + $0x20] sm:$0xff]  ;;  %v248_v32 = vld [vmem:[%s2469_s3 + $0x18] sm:$0xff] }
  0x1e   : > { %1496 = vmatprep.subr.mxu0 %v238_v8  ;;  %1532 = vmatprep.subr.mxu1 %v256_v24  ;;  %v247_v33 = vld [vmem:[%s2469_s3 + $0x10] sm:$0xff]  ;;  %v246_v34 = vld [vmem:[%s2469_s3 + $0x8] sm:$0xff]  ;;  %v245_v35 = vld [vmem:[%s2469_s3] sm:$0xff] }
  0x1f   : > { %1497 = vmatpush3.msra.mxu0 %v238_v8  ;;  %1533 = vmatpush3.msra.mxu1 %v256_v24  ;;  %v1242_v36 = vld [vmem:[%s2468_s2] ss:$0 sm:$0xff]  ;;  %v1258_v57 = vld [vmem:[%s2470_s4 + $0xf8] sm:$0xff]  ;;  %v1257_v59 = vld [vmem:[%s2470_s4 + $0xf0] sm:$0xff] }
  0x20   : > { %1498 = vmatprep.subr.mxu0 %v237_v10  ;;  %1534 = vmatprep.subr.mxu1 %v255_v25  ;;  %v476_v58 = vld [vmem:[%s2470_s4 + $0x78] sm:$0xff]  ;;  %v475_v60 = vld [vmem:[%s2470_s4 + $0x70] sm:$0xff]  ;;  %v1256_v61 = vld [vmem:[%s2470_s4 + $0xe8] sm:$0xff] }
  0x21   : > { %1499 = vmatpush3.msra.mxu0 %v237_v10  ;;  %1535 = vmatpush3.msra.mxu1 %v255_v25  ;;  %v474_v62 = vld [vmem:[%s2470_s4 + $0x68] sm:$0xff]  ;;  %v1255_v63 = vld [vmem:[%s2470_s4 + $0xe0] sm:$0xff]  ;;  %v1254_v1 = vld [vmem:[%s2470_s4 + $0xd8] sm:$0xff] }
  0x22   : > { %1500 = vmatprep.subr.mxu0 %v236_v12  ;;  %1536 = vmatprep.subr.mxu1 %v254_v26  ;;  %v473_v0 = vld [vmem:[%s2470_s4 + $0x60] sm:$0xff]  ;;  %v472_v2 = vld [vmem:[%s2470_s4 + $0x58] sm:$0xff]  ;;  %v1253_v3 = vld [vmem:[%s2470_s4 + $0xd0] sm:$0xff] }
  0x23   : > { %1501 = vmatpush3.msra.mxu0 %v236_v12  ;;  %1537 = vmatpush3.msra.mxu1 %v254_v26  ;;  %v471_v4 = vld [vmem:[%s2470_s4 + $0x50] sm:$0xff]  ;;  %v1252_v5 = vld [vmem:[%s2470_s4 + $0xc8] sm:$0xff]  ;;  %v1251_v8 = vld [vmem:[%s2470_s4 + $0xc0] sm:$0xff] }
  0x24   : > { %1502 = vmatprep.subr.mxu0 %v235_v13  ;;  %1538 = vmatprep.subr.mxu1 %v253_v27  ;;  %v470_v6 = vld [vmem:[%s2470_s4 + $0x48] sm:$0xff]  ;;  %v469_v9 = vld [vmem:[%s2470_s4 + $0x40] sm:$0xff]  ;;  %v1250_v10 = vld [vmem:[%s2470_s4 + $0xb8] sm:$0xff] }
  0x25   : > { %1503 = vmatpush3.msra.mxu0 %v235_v13  ;;  %1539 = vmatpush3.msra.mxu1 %v253_v27  ;;  %v468_v11 = vld [vmem:[%s2470_s4 + $0x38] sm:$0xff]  ;;  %v1249_v12 = vld [vmem:[%s2470_s4 + $0xb0] sm:$0xff]  ;;  %v1244_v25 = vld [vmem:[%s2470_s4 + $0x88] sm:$0xff] }
  0x26   : > { %1504 = vmatprep.subr.mxu0 %v234_v14  ;;  %1540 = vmatprep.subr.mxu1 %v252_v28  ;;  %v467_v13 = vld [vmem:[%s2470_s4 + $0x30] sm:$0xff]  ;;  %v462_v26 = vld [vmem:[%s2470_s4 + $0x8] sm:$0xff]  ;;  %v1243_v27 = vld [vmem:[%s2470_s4 + $0x80] sm:$0xff] }
  0x27   : > { %1505 = vmatpush3.msra.mxu0 %v234_v14  ;;  %1541 = vmatpush3.msra.mxu1 %v252_v28  ;;  %v1248_v14 = vld [vmem:[%s2470_s4 + $0xa8] sm:$0xff]  ;;  %v463_v24 = vld [vmem:[%s2470_s4 + $0x10] sm:$0xff]  ;;  %v461_v28 = vld [vmem:[%s2470_s4] sm:$0xff] }
  0x28   : > { %1506 = vmatprep.subr.mxu0 %v233_v15  ;;  %1542 = vmatprep.subr.mxu1 %v251_v29 }
  0x29   : > { %1507 = vmatpush3.msra.mxu0 %v233_v15  ;;  %1543 = vmatpush3.msra.mxu1 %v251_v29  ;;  %v466_v15 = vld [vmem:[%s2470_s4 + $0x28] sm:$0xff]  ;;  %v1274_v29 = vld [vmem:[%s2470_s4 + $0x178] sm:$0xff] }
  0x2a   : > { %1508 = vmatprep.subr.mxu0 %v232_v16  ;;  %1544 = vmatprep.subr.mxu1 %v250_v30 }
  0x2b   : > { %1509 = vmatpush3.msra.mxu0 %v232_v16  ;;  %1545 = vmatpush3.msra.mxu1 %v250_v30  ;;  %v1247_v16 = vld [vmem:[%s2470_s4 + $0xa0] sm:$0xff]  ;;  %v1290_v30 = vld [vmem:[%s2470_s4 + $0x1f8] sm:$0xff] }
  0x2c   : > { %1510 = vmatprep.subr.mxu0 %v231_v17  ;;  %1546 = vmatprep.subr.mxu1 %v249_v31 }
  0x2d   : > { %1511 = vmatpush3.msra.mxu0 %v231_v17  ;;  %1547 = vmatpush3.msra.mxu1 %v249_v31  ;;  %v465_v17 = vld [vmem:[%s2470_s4 + $0x20] sm:$0xff] }
  0x2e   : > { %1512 = vmatprep.subr.mxu0 %v230_v18  ;;  %1548 = vmatprep.subr.mxu1 %v248_v32 }
  0x2f   : > { %1513 = vmatpush3.msra.mxu0 %v230_v18  ;;  %1549 = vmatpush3.msra.mxu1 %v248_v32  ;;  %v1246_v18 = vld [vmem:[%s2470_s4 + $0x98] sm:$0xff] }
  0x30   : > { %1514 = vmatprep.subr.mxu0 %v229_v19  ;;  %1550 = vmatprep.subr.mxu1 %v247_v33 }
  0x31   : > { %1515 = vmatpush3.msra.mxu0 %v229_v19  ;;  %1551 = vmatpush3.msra.mxu1 %v247_v33  ;;  %v464_v19 = vld [vmem:[%s2470_s4 + $0x18] sm:$0xff] }
  0x32   : > { %1516 = vmatprep.subr.mxu0 %v228_v20  ;;  %1552 = vmatprep.subr.mxu1 %v246_v34 }
  0x33   : > { %1517 = vmatpush3.msra.mxu0 %v228_v20  ;;  %1553 = vmatpush3.msra.mxu1 %v246_v34  ;;  %v1245_v20 = vld [vmem:[%s2470_s4 + $0x90] sm:$0xff] }
  0x34   : > { %1519 = vmatmul.mubr.f32.vlgmr.msra.gmra.mxu0 %v2061_v21  ;;  %1554 = vmatprep.subr.mxu1 %v245_v35 }
  0x35   : > { %1521 = vmatprep.mubr.f32.mxu0 %v2064_v22  ;;  %1555 = vmatpush3.msra.mxu1 %v245_v35 }
  0x36   : > { %1562 = vmatprep.subr.mxu0 %v1258_v57  ;;  %1600 = vmatprep.subr.mxu1 %v476_v58 }
  0x37   : > { %1563 = vmatpush3.msra.mxu0 %v1258_v57  ;;  %v1269_v57 = vld [vmem:[%s2470_s4 + $0x150] sm:$0xff] }
  0x38   : > { %1522 = vmatmul.mubr.f32.gmra.mxu0 %v2069_v23  ;;  %1564 = vmatprep.subr.mxu0 %v1257_v59 }
  0x39   : > { %1565 = vmatpush3.msra.mxu0 %v1257_v59 }
  0x3a   : > { %1566 = vmatprep.subr.mxu0 %v1256_v61 }
  0x3b   : > { %1567 = vmatpush3.msra.mxu0 %v1256_v61  ;;  %v1268_v61 = vld [vmem:[%s2470_s4 + $0x148] sm:$0xff] }
  0x3c   : > { %1568 = vmatprep.subr.mxu0 %v1255_v63 }
  0x3d   : > { %1569 = vmatpush3.msra.mxu0 %v1255_v63 }
  0x3e   : > { %1570 = vmatprep.subr.mxu0 %v1254_v1 }
  0x3f   : > { %1571 = vmatpush3.msra.mxu0 %v1254_v1 }
  0x40   : > { %1572 = vmatprep.subr.mxu0 %v1253_v3 }
  0x41   : > { %1573 = vmatpush3.msra.mxu0 %v1253_v3 }
  0x42   : > { %1574 = vmatprep.subr.mxu0 %v1252_v5 }
  0x43   : > { %1575 = vmatpush3.msra.mxu0 %v1252_v5  ;;  %v1266_v5 = vld [vmem:[%s2470_s4 + $0x138] sm:$0xff] }
  0x44   : > { %1576 = vmatprep.subr.mxu0 %v1251_v8 }
  0x45   : > { %1577 = vmatpush3.msra.mxu0 %v1251_v8  ;;  %v1282_v8 = vld [vmem:[%s2470_s4 + $0x1b8] sm:$0xff] }
  0x46   : > { %1578 = vmatprep.subr.mxu0 %v1250_v10 }
  0x47   : > { %1579 = vmatpush3.msra.mxu0 %v1250_v10  ;;  %v1265_v10 = vld [vmem:[%s2470_s4 + $0x130] sm:$0xff] }
  0x48   : > { %1580 = vmatprep.subr.mxu0 %v1249_v12 }
  0x49   : > { %1581 = vmatpush3.msra.mxu0 %v1249_v12  ;;  %v1264_v12 = vld [vmem:[%s2470_s4 + $0x128] sm:$0xff] }
  0x4a   : > { %1582 = vmatprep.subr.mxu0 %v1248_v14 }
  0x4b   : > { %1583 = vmatpush3.msra.mxu0 %v1248_v14 }
  0x4c   : > { %1584 = vmatprep.subr.mxu0 %v1247_v16 }
  0x4d   : > { %1585 = vmatpush3.msra.mxu0 %v1247_v16  ;;  %v1279_v16 = vld [vmem:[%s2470_s4 + $0x1a0] sm:$0xff] }
  0x4e   : > { %1586 = vmatprep.subr.mxu0 %v1246_v18 }
  0x4f   : > { %1587 = vmatpush3.msra.mxu0 %v1246_v18  ;;  %v1262_v18 = vld [vmem:[%s2470_s4 + $0x118] sm:$0xff] }
  0x50   : > { %1588 = vmatprep.subr.mxu0 %v1245_v20 }
  0x51   : > { %1589 = vmatpush3.msra.mxu0 %v1245_v20 }
  0x52   : > { %1590 = vmatprep.subr.mxu0 %v1244_v25 }
  0x53   : > { %1591 = vmatpush3.msra.mxu0 %v1244_v25  ;;  %v1277_v25 = vld [vmem:[%s2470_s4 + $0x190] sm:$0xff] }
  0x54   : > { %1592 = vmatprep.subr.mxu0 %v1243_v27 }
  0x55   : > { %1593 = vmatpush3.msra.mxu0 %v1243_v27  ;;  %v1276_v27 = vld [vmem:[%s2470_s4 + $0x188] sm:$0xff] }
  0x56   : > { %1638 = vmatprep.subr.mxu0 %v1274_v29 }
  0xf4   : > { %v1520_v37 = vpop.f32.mrf.mxu0 }
  0xf5   : > { %v339_v38 = vadd.f32 %v1520_v37, %v1242_v36 }
  0xf6   : > { %v333_v39 = vpop.f32.mrf.mxu0 }
  0xf7   : > { %1835 = vtanh.f32 %v339_v38  ;;  %v334_v40 = vadd.f32 %v1242_v36, %v333_v39 }
  0xf8   : > { %v1523_v41 = vpop.f32.mrf.mxu0 }
  0xf9   : > { %1837 = vtanh.f32 %v334_v40  ;;  %v349_v42 = vadd.f32 %v1523_v41, %v1242_v36 }
  0xfa   : > { %v343_v43 = vpop.f32.mrf.mxu0 }
  0xfb   : > { %1839 = vtanh.f32 %v349_v42  ;;  %v344_v44 = vadd.f32 %v1242_v36, %v343_v43  ;;  %v1289_v43 = vld [vmem:[%s2470_s4 + $0x1f0] sm:$0xff] }
  0xfd   : > { %1841 = vtanh.f32 %v344_v44  ;;  %v1273_v44 = vld [vmem:[%s2470_s4 + $0x170] sm:$0xff] }
 0x104   : > { %v1836_v45 = vpop.eup %1835 }
 0x105   : > { %v357_v47 = vmul.f32 %v1836_v45, %v1836_v45 }
 0x106   : > { %v1838_v46 = vpop.eup %1837 }
 0x107   : > { %v356_v48 = vmul.f32 %v1838_v46, %v1838_v46  ;;  %v361_v53 = vsub.f32 1.0, %v357_v47  ;;  %v1272_v47 = vld [vmem:[%s2470_s4 + $0x168] sm:$0xff] }
 0x108   : > { %v1840_v49 = vpop.eup %1839 }
 0x109   : > { %v360_v50 = vsub.f32 1.0, %v356_v48  ;;  %v359_v51 = vmul.f32 %v1840_v49, %v1840_v49  ;;  %v1288_v48 = vld [vmem:[%s2470_s4 + $0x1e8] sm:$0xff]  ;;  %v1271_v49 = vld [vmem:[%s2470_s4 + $0x160] sm:$0xff] }
 0x10a   : > { %v1842_v52 = vpop.eup %1841 }
 0x10b   : > { %1556 = vmatprep.mubr.f32.mxu1 %v360_v50  ;;  %v358_v54 = vmul.f32 %v1842_v52, %v1842_v52  ;;  %v363_v55 = vsub.f32 1.0, %v359_v51  ;;  %v1287_v50 = vld [vmem:[%s2470_s4 + $0x1e0] sm:$0xff] }
 0x10c   : > { %1557 = vmatmul.mubr.f32.vlgmr.msra.gmra.mxu1 %v361_v53  ;;  %v1270_v53 = vld [vmem:[%s2470_s4 + $0x158] sm:$0xff] }
 0x10d   : > { %v362_v56 = vsub.f32 1.0, %v358_v54  ;;  %1601 = vmatpush3.msra.mxu1 %v476_v58  ;;  %v1286_v54 = vld [vmem:[%s2470_s4 + $0x1d8] sm:$0xff]  ;;  %v1285_v58 = vld [vmem:[%s2470_s4 + $0x1d0] sm:$0xff] }
 0x10e   : > { %1602 = vmatprep.subr.mxu1 %v475_v60 }
 0x10f   : > { %1559 = vmatprep.mubr.f32.mxu1 %v362_v56  ;;  %1603 = vmatpush3.msra.mxu1 %v475_v60 }
 0x110   : > { %1560 = vmatmul.mubr.f32.gmra.mxu1 %v363_v55  ;;  %1604 = vmatprep.subr.mxu1 %v474_v62 }
 0x111   : > { %1605 = vmatpush3.msra.mxu1 %v474_v62  ;;  %v1284_v62 = vld [vmem:[%s2470_s4 + $0x1c8] sm:$0xff] }
 0x112   : > { %1606 = vmatprep.subr.mxu1 %v473_v0 }
 0x113   : > { %1607 = vmatpush3.msra.mxu1 %v473_v0  ;;  %v1267_v0 = vld [vmem:[%s2470_s4 + $0x140] sm:$0xff] }
 0x114   : > { %1608 = vmatprep.subr.mxu1 %v472_v2 }
 0x115   : > { %1609 = vmatpush3.msra.mxu1 %v472_v2  ;;  %v1283_v2 = vld [vmem:[%s2470_s4 + $0x1c0] sm:$0xff] }
 0x116   : > { %1610 = vmatprep.subr.mxu1 %v471_v4 }
 0x117   : > { %1611 = vmatpush3.msra.mxu1 %v471_v4 }
 0x118   : > { %1612 = vmatprep.subr.mxu1 %v470_v6 }
 0x119   : > { %1613 = vmatpush3.msra.mxu1 %v470_v6 }
 0x11a   : > { %1614 = vmatprep.subr.mxu1 %v469_v9 }
 0x11b   : > { %1615 = vmatpush3.msra.mxu1 %v469_v9 }
 0x11c   : > { %1616 = vmatprep.subr.mxu1 %v468_v11 }
 0x11d   : > { %1617 = vmatpush3.msra.mxu1 %v468_v11  ;;  %v1281_v11 = vld [vmem:[%s2470_s4 + $0x1b0] sm:$0xff] }
 0x11e   : > { %1618 = vmatprep.subr.mxu1 %v467_v13 }
 0x11f   : > { %1619 = vmatpush3.msra.mxu1 %v467_v13  ;;  %v1280_v13 = vld [vmem:[%s2470_s4 + $0x1a8] sm:$0xff] }
 0x120   : > { %1620 = vmatprep.subr.mxu1 %v466_v15 }
 0x121   : > { %1621 = vmatpush3.msra.mxu1 %v466_v15  ;;  %v1263_v15 = vld [vmem:[%s2470_s4 + $0x120] sm:$0xff] }
 0x122   : > { %1622 = vmatprep.subr.mxu1 %v465_v17 }
 0x123   : > { %1623 = vmatpush3.msra.mxu1 %v465_v17 }
 0x124   : > { %1624 = vmatprep.subr.mxu1 %v464_v19 }
 0x125   : > { %1625 = vmatpush3.msra.mxu1 %v464_v19  ;;  %v1278_v19 = vld [vmem:[%s2470_s4 + $0x198] sm:$0xff] }
 0x126   : > { %1626 = vmatprep.subr.mxu1 %v463_v24 }
 0x127   : > { %1627 = vmatpush3.msra.mxu1 %v463_v24  ;;  %v1261_v24 = vld [vmem:[%s2470_s4 + $0x110] sm:$0xff] }
 0x128   : > { %1628 = vmatprep.subr.mxu1 %v462_v26 }
 0x129   : > { %1629 = vmatpush3.msra.mxu1 %v462_v26  ;;  %v1260_v26 = vld [vmem:[%s2470_s4 + $0x108] sm:$0xff] }
 0x12a   : > { %1630 = vmatprep.subr.mxu1 %v461_v28 }
 0x12b   : > { %1631 = vmatpush3.msra.mxu1 %v461_v28 }
 0x12c   : > { %1676 = vmatprep.subr.mxu1 %v1290_v30 }
 0x1cc   : > { %v1558_v31 = vpop.f32.mrf.mxu1 }
 0x1ce   : > { %v430_v32 = vpop.f32.mrf.mxu1 }
 0x1cf   : > { %449 = vrot.lane.b32.xlu1 %v430_v32, %s1905_s17  ;;  %477 = vrot.lane.b32.xlu0 %v430_v32, %s1906_s23 }
 0x1d0   : > { %v1561_v33 = vpop.f32.mrf.mxu1 }
 0x1d2   : > { %v440_v34 = vpop.f32.mrf.mxu1 }
 0x1d3   : > { %451 = vrot.lane.b32.xlu1 %v1558_v31, %s1905_s17  ;;  %479 = vrot.lane.b32.xlu0 %v1558_v31, %s1906_s23 }
 0x1d7   : > { %678 = vrot.lane.b32.xlu1 %v1558_v31, %s1907_s25  ;;  %676 = vrot.lane.b32.xlu0 %v430_v32, %s1907_s25 }
 0x1db   : > { %483 = vrot.lane.b32.xlu1 %v1561_v33, %s1906_s23  ;;  %481 = vrot.lane.b32.xlu0 %v440_v34, %s1906_s23 }
 0x1df   : > { %455 = vrot.lane.b32.xlu1 %v1561_v33, %s1905_s17  ;;  %453 = vrot.lane.b32.xlu0 %v440_v34, %s1905_s17 }
 0x1e3   : > { %796 = vrot.lane.b32.xlu1 %v1558_v31, %s1908_s26  ;;  %794 = vrot.lane.b32.xlu0 %v430_v32, %s1908_s26 }
 0x1e7   : > { %682 = vrot.lane.b32.xlu1 %v1561_v33, %s1907_s25  ;;  %912 = vrot.lane.b32.xlu0 %v430_v32, %s1909_s6 }
 0x1eb   : > { %800 = vrot.lane.b32.xlu1 %v1561_v33, %s1908_s26  ;;  %1030 = vrot.lane.b32.xlu0 %v430_v32, %s1910_s7 }
 0x1ef   : > { %914 = vrot.lane.b32.xlu1 %v1558_v31, %s1909_s6  ;;  %680 = vrot.lane.b32.xlu0 %v440_v34, %s1907_s25  ;;  %s216_s25 = sand.u32 1, %s1895_s19  }
 0x1f0   : > { %s1169_s10 = scalar_lea.sflag [#allocation3], %s216_s25 }
 0x1f3   : > { %1032 = vrot.lane.b32.xlu1 %v1558_v31, %s1910_s7  ;;  %798 = vrot.lane.b32.xlu0 %v440_v34, %s1908_s26  ;;  %s1323_s26 = sshll.u32 %s1963_s22, 4  ;;  %s1849_s22 = scalar_lea.vmem %s1848_s13, 32 }
 0x1f4   : > { %s1179_s30 = scalar_lea.hbm %s2471_s5, %s1323_s26 }
 0x1f7   : > { %918 = vrot.lane.b32.xlu1 %v1561_v33, %s1909_s6  ;;  %916 = vrot.lane.b32.xlu0 %v440_v34, %s1909_s6  ;;  %s217_s6 = scalar_lea.vmem [#allocation2], %s216_s25 }
 0x1fb   : > { %1036 = vrot.lane.b32.xlu1 %v1561_v33, %s1910_s7  ;;  %1034 = vrot.lane.b32.xlu0 %v440_v34, %s1910_s7  ;;  %s1181_s7 = sshll.u32 %s217_s6, 4  ;;  %s1182_s7 = int_to_ptr.vmem [resolvable:$true] %s1181_s7 }
 0x1fc   : > { %s1843_s11 = scalar_lea.vmem %s1182_s7, 16  ;;  %p1850_p0 = scmp.lt.s32.totalorder %s1182_s7, %s1848_s13 }
 0x1fd   : > { %p1844_p11 = scmp.ne.s32.totalorder %s1182_s7, %s1843_s11  ;;  %p1851_p1 = scmp.lt.s32.totalorder %s1849_s22, %s1843_s11 }
 0x1ff   : > { %p1845_p12 = pnand %p1844_p11, %p1980_p5  ;;  %p1852_p2 = por %p1851_p1, %p1850_p0 }
 0x201   : > { %p1846_p13 = pneg %p1845_p12 }
 0x203   : > { %p1853_p3 = pnand %p1852_p2, %p1846_p13 }
 0x241   : > { %v450_v35 = vpop.permute.xlu1 %449  ;;  %v478_v36 = vpop.permute.xlu0 %477 }
 0x242   : > { %v457_v37 = vmul.f32 %v450_v35, %v2018_v7  ;;  %v485_v38 = vmul.f32 %v478_v36, %v2018_v7  ;;  %v1306_v35 = vld [vmem:[%s2470_s4 + $0x278] sm:$0xff] }
 0x243   : > { %v1322_v36 = vld [vmem:[%s2470_s4 + $0x2f8] sm:$0xff] }
 0x244   : > { %1594 = vmatprep.mubr.f32.mxu0 %v485_v38  ;;  %1632 = vmatprep.mubr.f32.mxu1 %v457_v37 }
 0x245   : > { %v452_v39 = vpop.permute.xlu1 %451  ;;  %v480_v40 = vpop.permute.xlu0 %479 }
 0x246   : > { %v458_v41 = vmul.f32 %v452_v39, %v2061_v21  ;;  %v486_v42 = vmul.f32 %v480_v40, %v2061_v21  ;;  %v1305_v39 = vld [vmem:[%s2470_s4 + $0x270] sm:$0xff] }
 0x247   : > { %v1321_v40 = vld [vmem:[%s2470_s4 + $0x2f0] sm:$0xff] }
 0x248   : > { %1595 = vmatmul.mubr.f32.vlgmr.msra.gmra.mxu0 %v486_v42  ;;  %1633 = vmatmul.mubr.f32.vlgmr.msra.gmra.mxu1 %v458_v41 }
 0x249   : > { %1639 = vmatpush3.msra.mxu0 %v1274_v29  ;;  %1677 = vmatpush3.msra.mxu1 %v1290_v30  ;;  %v2223_v45 = vpop.permute.xlu1 %678  ;;  %v677_v46 = vpop.permute.xlu0 %676  ;;  %v1259_v29 = vld [vmem:[%s2470_s4 + $0x100] sm:$0xff] }
 0x24a   : > { %1678 = vmatprep.subr.mxu1 %v1289_v43  ;;  %1640 = vmatprep.subr.mxu0 %v1273_v44  ;;  %v684_v60 = vmul.f32 %v677_v46, %v2018_v7  ;;  %v1275_v30 = vld [vmem:[%s2470_s4 + $0x180] sm:$0xff]  ;;  %v685_v32 = vmul.f32 %v2223_v45, %v2061_v21 }
 0x24b   : > { %1641 = vmatpush3.msra.mxu0 %v1273_v44  ;;  %1679 = vmatpush3.msra.mxu1 %v1289_v43  ;;  %v1304_v43 = vld [vmem:[%s2470_s4 + $0x268] sm:$0xff] }
 0x24c   : > { %1642 = vmatprep.subr.mxu0 %v1272_v47  ;;  %1680 = vmatprep.subr.mxu1 %v1288_v48  ;;  %v1320_v44 = vld [vmem:[%s2470_s4 + $0x2e8] sm:$0xff] }
 0x24d   : > { %1643 = vmatpush3.msra.mxu0 %v1272_v47  ;;  %1681 = vmatpush3.msra.mxu1 %v1288_v48  ;;  %v484_v51 = vpop.permute.xlu1 %483  ;;  %v482_v52 = vpop.permute.xlu0 %481  ;;  %v1303_v47 = vld [vmem:[%s2470_s4 + $0x260] sm:$0xff] }
 0x24e   : > { %1644 = vmatprep.subr.mxu0 %v1271_v49  ;;  %1682 = vmatprep.subr.mxu1 %v1287_v50  ;;  %v487_v55 = vmul.f32 %v482_v52, %v2064_v22  ;;  %v488_v56 = vmul.f32 %v484_v51, %v2069_v23  ;;  %v1319_v48 = vld [vmem:[%s2470_s4 + $0x2e0] sm:$0xff]  ;;  %v1317_v51 = vld [vmem:[%s2470_s4 + $0x2d0] sm:$0xff]  ;;  %v1300_v52 = vld [vmem:[%s2470_s4 + $0x248] sm:$0xff] }
 0x24f   : > { %1645 = vmatpush3.msra.mxu0 %v1271_v49  ;;  %1683 = vmatpush3.msra.mxu1 %v1287_v50  ;;  %v1302_v49 = vld [vmem:[%s2470_s4 + $0x258] sm:$0xff]  ;;  %v1301_v50 = vld [vmem:[%s2470_s4 + $0x250] sm:$0xff] }
 0x250   : > { %1646 = vmatprep.subr.mxu0 %v1270_v53  ;;  %1684 = vmatprep.subr.mxu1 %v1286_v54 }
 0x251   : > { %1597 = vmatprep.mubr.f32.mxu0 %v487_v55  ;;  %1647 = vmatpush3.msra.mxu0 %v1270_v53  ;;  %v454_v59 = vpop.permute.xlu0 %453  ;;  %v456_v1 = vpop.permute.xlu1 %455  ;;  %v1316_v53 = vld [vmem:[%s2470_s4 + $0x2c8] sm:$0xff]  ;;  %v1315_v55 = vld [vmem:[%s2470_s4 + $0x2c0] sm:$0xff] }
 0x252   : > { %1685 = vmatpush3.msra.mxu1 %v1286_v54  ;;  %1648 = vmatprep.subr.mxu0 %v1269_v57  ;;  %v459_v63 = vmul.f32 %v454_v59, %v2064_v22  ;;  %v460_v4 = vmul.f32 %v456_v1, %v2069_v23  ;;  %v1299_v54 = vld [vmem:[%s2470_s4 + $0x240] sm:$0xff]  ;;  %v1297_v59 = vld [vmem:[%s2470_s4 + $0x230] sm:$0xff] }
 0x253   : > { %1686 = vmatprep.subr.mxu1 %v1285_v58  ;;  %1598 = vmatmul.mubr.f32.gmra.mxu0 %v488_v56  ;;  %v1311_v1 = vld [vmem:[%s2470_s4 + $0x2a0] sm:$0xff] }
 0x254   : > { %1649 = vmatpush3.msra.mxu0 %v1269_v57  ;;  %1670 = vmatprep.mubr.f32.mxu0 %v684_v60  ;;  %v1298_v57 = vld [vmem:[%s2470_s4 + $0x238] sm:$0xff]  ;;  %v1313_v60 = vld [vmem:[%s2470_s4 + $0x2b0] sm:$0xff] }
 0x255   : > { %1687 = vmatpush3.msra.mxu1 %v1285_v58  ;;  %1650 = vmatprep.subr.mxu0 %v1268_v61  ;;  %v795_v3 = vpop.permute.xlu0 %794  ;;  %v797_v17 = vpop.permute.xlu1 %796  ;;  %v1314_v58 = vld [vmem:[%s2470_s4 + $0x2b8] sm:$0xff] }
 0x256   : > { %1688 = vmatprep.subr.mxu1 %v1284_v62  ;;  %1651 = vmatpush3.msra.mxu0 %v1268_v61  ;;  %v802_v6 = vmul.f32 %v795_v3, %v2018_v7  ;;  %v803_v33 = vmul.f32 %v797_v17, %v2061_v21  ;;  %v1296_v61 = vld [vmem:[%s2470_s4 + $0x228] sm:$0xff]  ;;  %v1310_v3 = vld [vmem:[%s2470_s4 + $0x298] sm:$0xff] }
 0x257   : > { %1689 = vmatpush3.msra.mxu1 %v1284_v62  ;;  %1652 = vmatprep.subr.mxu0 %v1267_v0  ;;  %v1312_v62 = vld [vmem:[%s2470_s4 + $0x2a8] sm:$0xff] }
 0x258   : > { %1690 = vmatprep.subr.mxu1 %v1283_v2  ;;  %1635 = vmatprep.mubr.f32.mxu1 %v459_v63 }
 0x259   : > { %1653 = vmatpush3.msra.mxu0 %v1267_v0  ;;  %1691 = vmatpush3.msra.mxu1 %v1283_v2  ;;  %v2273_v9 = vpop.permute.xlu0 %912  ;;  %v683_v28 = vpop.permute.xlu1 %682  ;;  %v1295_v0 = vld [vmem:[%s2470_s4 + $0x220] sm:$0xff]  ;;  %v1294_v2 = vld [vmem:[%s2470_s4 + $0x218] sm:$0xff] }
 0x25a   : > { %1636 = vmatmul.mubr.f32.gmra.mxu1 %v460_v4  ;;  %1654 = vmatprep.subr.mxu0 %v1266_v5  ;;  %v687_v41 = vmul.f32 %v683_v28, %v2069_v23  ;;  %v920_v45 = vmul.f32 %v2273_v9, %v2018_v7  ;;  %v1292_v9 = vld [vmem:[%s2470_s4 + $0x208] sm:$0xff] }
 0x25b   : > { %1692 = vmatprep.subr.mxu1 %v1282_v8  ;;  %1655 = vmatpush3.msra.mxu0 %v1266_v5  ;;  %v1293_v5 = vld [vmem:[%s2470_s4 + $0x210] sm:$0xff] }
 0x25c   : > { %1693 = vmatpush3.msra.mxu1 %v1282_v8  ;;  %1708 = vmatprep.mubr.f32.mxu1 %v802_v6  ;;  %v1309_v6 = vld [vmem:[%s2470_s4 + $0x290] sm:$0xff] }
 0x25d   : > { %1656 = vmatprep.subr.mxu0 %v1265_v10  ;;  %1694 = vmatprep.subr.mxu1 %v1281_v11  ;;  %v2287_v14 = vpop.permute.xlu0 %1030  ;;  %v801_v38 = vpop.permute.xlu1 %800 }
 0x25e   : > { %1657 = vmatpush3.msra.mxu0 %v1265_v10  ;;  %1695 = vmatpush3.msra.mxu1 %v1281_v11  ;;  %v805_v42 = vmul.f32 %v801_v38, %v2069_v23  ;;  %v1038_v46 = vmul.f32 %v2287_v14, %v2018_v7  ;;  %v1318_v7 = vld [vmem:[%s2470_s4 + $0x2d8] sm:$0xff]  ;;  %v1308_v10 = vld [vmem:[%s2470_s4 + $0x288] sm:$0xff]  ;;  %v1291_v11 = vld [vmem:[%s2470_s4 + $0x200] sm:$0xff] }
 0x25f   : > { %1658 = vmatprep.subr.mxu0 %v1264_v12  ;;  %1696 = vmatprep.subr.mxu1 %v1280_v13 }
 0x260   : > { %1659 = vmatpush3.msra.mxu0 %v1264_v12  ;;  %1697 = vmatpush3.msra.mxu1 %v1280_v13  ;;  %v1307_v12 = vld [vmem:[%s2470_s4 + $0x280] sm:$0xff] }
 0x261   : > { %1660 = vmatprep.subr.mxu0 %v1263_v15  ;;  %1698 = vmatprep.subr.mxu1 %v1279_v16  ;;  %v681_v20 = vpop.permute.xlu0 %680  ;;  %v915_v56 = vpop.permute.xlu1 %914 }
 0x262   : > { %1661 = vmatpush3.msra.mxu0 %v1263_v15  ;;  %1699 = vmatpush3.msra.mxu1 %v1279_v16  ;;  %v686_v37 = vmul.f32 %v681_v20, %v2064_v22  ;;  %v921_v14 = vmul.f32 %v915_v56, %v2061_v21 }
 0x263   : > { %1662 = vmatprep.subr.mxu0 %v1262_v18  ;;  %1700 = vmatprep.subr.mxu1 %v1278_v19 }
 0x264   : > { %1663 = vmatpush3.msra.mxu0 %v1262_v18  ;;  %1701 = vmatpush3.msra.mxu1 %v1278_v19 }
 0x265   : > { %1664 = vmatprep.subr.mxu0 %v1261_v24  ;;  %1702 = vmatprep.subr.mxu1 %v1277_v25  ;;  %v799_v31 = vpop.permute.xlu0 %798  ;;  %v1033_v63 = vpop.permute.xlu1 %1032 }
 0x266   : > { %1665 = vmatpush3.msra.mxu0 %v1261_v24  ;;  %1703 = vmatpush3.msra.mxu1 %v1277_v25  ;;  %v804_v34 = vmul.f32 %v799_v31, %v2064_v22  ;;  %v1039_v15 = vmul.f32 %v1033_v63, %v2061_v21 }
 0x267   : > { %1666 = vmatprep.subr.mxu0 %v1260_v26  ;;  %1704 = vmatprep.subr.mxu1 %v1276_v27 }
 0x268   : > { %1667 = vmatpush3.msra.mxu0 %v1260_v26  ;;  %1705 = vmatpush3.msra.mxu1 %v1276_v27 }
 0x269   : > { %1668 = vmatprep.subr.mxu0 %v1259_v29  ;;  %1706 = vmatprep.subr.mxu1 %v1275_v30  ;;  %v917_v4 = vpop.permute.xlu0 %916  ;;  %v919_v8 = vpop.permute.xlu1 %918 }
 0x26a   : > { %1669 = vmatpush3.msra.mxu0 %v1259_v29  ;;  %1707 = vmatpush3.msra.mxu1 %v1275_v30  ;;  %v922_v16 = vmul.f32 %v917_v4, %v2064_v22  ;;  %v923_v19 = vmul.f32 %v919_v8, %v2069_v23 }
 0x26b   : > { %1671 = vmatmul.mubr.f32.vlgmr.msra.gmra.mxu0 %v685_v32  ;;  %1709 = vmatmul.mubr.f32.vlgmr.msra.gmra.mxu1 %v803_v33 }
 0x26c   : > { %1714 = vmatprep.subr.mxu0 %v1306_v35  ;;  %1752 = vmatprep.subr.mxu1 %v1322_v36 }
 0x26d   : > { %1673 = vmatprep.mubr.f32.mxu0 %v686_v37  ;;  %1711 = vmatprep.mubr.f32.mxu1 %v804_v34  ;;  %v1035_v13 = vpop.permute.xlu0 %1034  ;;  %v1037_v17 = vpop.permute.xlu1 %1036 }
 0x26e   : > { %1715 = vmatpush3.msra.mxu0 %v1306_v35  ;;  %1753 = vmatpush3.msra.mxu1 %v1322_v36  ;;  %v1040_v18 = vmul.f32 %v1035_v13, %v2064_v22  ;;  %v1041_v20 = vmul.f32 %v1037_v17, %v2069_v23 }
 0x26f   : > { %1716 = vmatprep.subr.mxu0 %v1305_v39  ;;  %1754 = vmatprep.subr.mxu1 %v1321_v40 }
 0x270   : > { %1717 = vmatpush3.msra.mxu0 %v1305_v39  ;;  %1755 = vmatpush3.msra.mxu1 %v1321_v40 }
 0x271   : > { %1674 = vmatmul.mubr.f32.gmra.mxu0 %v687_v41  ;;  %1712 = vmatmul.mubr.f32.gmra.mxu1 %v805_v42 }
 0x272   : > { %1718 = vmatprep.subr.mxu0 %v1304_v43  ;;  %1756 = vmatprep.subr.mxu1 %v1320_v44 }
 0x273   : > { %1719 = vmatpush3.msra.mxu0 %v1304_v43  ;;  %1746 = vmatprep.mubr.f32.mxu0 %v920_v45 }
 0x274   : > { %1757 = vmatpush3.msra.mxu1 %v1320_v44  ;;  %1784 = vmatprep.mubr.f32.mxu1 %v1038_v46 }
 0x275   : > { %1720 = vmatprep.subr.mxu0 %v1303_v47  ;;  %1758 = vmatprep.subr.mxu1 %v1319_v48 }
 0x276   : > { %1721 = vmatpush3.msra.mxu0 %v1303_v47  ;;  %1759 = vmatpush3.msra.mxu1 %v1319_v48 }
 0x277   : > { %1722 = vmatprep.subr.mxu0 %v1302_v49  ;;  %1760 = vmatprep.subr.mxu1 %v1318_v7 }
 0x278   : > { %1723 = vmatpush3.msra.mxu0 %v1302_v49  ;;  %1761 = vmatpush3.msra.mxu1 %v1318_v7 }
 0x279   : > { %1724 = vmatprep.subr.mxu0 %v1301_v50  ;;  %1762 = vmatprep.subr.mxu1 %v1317_v51 }
 0x27a   : > { %1725 = vmatpush3.msra.mxu0 %v1301_v50  ;;  %1763 = vmatpush3.msra.mxu1 %v1317_v51 }
 0x27b   : > { %1726 = vmatprep.subr.mxu0 %v1300_v52  ;;  %1764 = vmatprep.subr.mxu1 %v1316_v53 }
 0x27c   : > { %1727 = vmatpush3.msra.mxu0 %v1300_v52  ;;  %1765 = vmatpush3.msra.mxu1 %v1316_v53 }
 0x27d   : > { %1728 = vmatprep.subr.mxu0 %v1299_v54  ;;  %1766 = vmatprep.subr.mxu1 %v1315_v55 }
 0x27e   : > { %1729 = vmatpush3.msra.mxu0 %v1299_v54  ;;  %1767 = vmatpush3.msra.mxu1 %v1315_v55 }
 0x27f   : > { %1730 = vmatprep.subr.mxu0 %v1298_v57  ;;  %1768 = vmatprep.subr.mxu1 %v1314_v58 }
 0x280   : > { %1731 = vmatpush3.msra.mxu0 %v1298_v57  ;;  %1769 = vmatpush3.msra.mxu1 %v1314_v58 }
 0x281   : > { %1732 = vmatprep.subr.mxu0 %v1297_v59  ;;  %1770 = vmatprep.subr.mxu1 %v1313_v60 }
 0x282   : > { %1733 = vmatpush3.msra.mxu0 %v1297_v59  ;;  %1771 = vmatpush3.msra.mxu1 %v1313_v60 }
 0x283   : > { %1734 = vmatprep.subr.mxu0 %v1296_v61  ;;  %1772 = vmatprep.subr.mxu1 %v1312_v62 }
 0x284   : > { %1735 = vmatpush3.msra.mxu0 %v1296_v61  ;;  %1773 = vmatpush3.msra.mxu1 %v1312_v62 }
 0x285   : > { %1736 = vmatprep.subr.mxu0 %v1295_v0  ;;  %1774 = vmatprep.subr.mxu1 %v1311_v1 }
 0x286   : > { %1737 = vmatpush3.msra.mxu0 %v1295_v0  ;;  %1775 = vmatpush3.msra.mxu1 %v1311_v1 }
 0x287   : > { %1738 = vmatprep.subr.mxu0 %v1294_v2  ;;  %1776 = vmatprep.subr.mxu1 %v1310_v3 }
 0x288   : > { %1739 = vmatpush3.msra.mxu0 %v1294_v2  ;;  %1777 = vmatpush3.msra.mxu1 %v1310_v3 }
 0x289   : > { %1740 = vmatprep.subr.mxu0 %v1293_v5  ;;  %1778 = vmatprep.subr.mxu1 %v1309_v6 }
 0x28a   : > { %1741 = vmatpush3.msra.mxu0 %v1293_v5  ;;  %1779 = vmatpush3.msra.mxu1 %v1309_v6 }
 0x28b   : > { %1742 = vmatprep.subr.mxu0 %v1292_v9  ;;  %1780 = vmatprep.subr.mxu1 %v1308_v10 }
 0x28c   : > { %1743 = vmatpush3.msra.mxu0 %v1292_v9  ;;  %1781 = vmatpush3.msra.mxu1 %v1308_v10 }
 0x28d   : > { %1744 = vmatprep.subr.mxu0 %v1291_v11  ;;  %1782 = vmatprep.subr.mxu1 %v1307_v12 }
 0x28e   : > { %1745 = vmatpush3.msra.mxu0 %v1291_v11  ;;  %1783 = vmatpush3.msra.mxu1 %v1307_v12 }
 0x28f   : > { %1747 = vmatmul.mubr.f32.vlgmr.msra.gmra.mxu0 %v921_v14  ;;  %1785 = vmatmul.mubr.f32.vlgmr.msra.gmra.mxu1 %v1039_v15 }
 0x290   : > { %1749 = vmatprep.mubr.f32.mxu0 %v922_v16  ;;  %1787 = vmatprep.mubr.f32.mxu1 %v1040_v18 }
 0x293   : > { %1750 = vmatmul.mubr.f32.gmra.mxu0 %v923_v19  ;;  %1788 = vmatmul.mubr.f32.gmra.mxu1 %v1041_v20 }
 0x308   : > { %v1596_v21 = vpop.f32.mrf.mxu0  ;;  %v1634_v24 = vpop.f32.mrf.mxu1 }
 0x309   : > { %v663_v34 = vadd.f32 %v1634_v24, %v1596_v21 }
 0x30a   : > { %v572_v25 = vpop.f32.mrf.mxu0  ;;  %v657_v26 = vpop.f32.mrf.mxu1 }
 0x30b   : > { %v658_v37 = vadd.f32 %v657_v26, %v572_v25 }
 0x313   : > { %v1599_v27 = vpop.f32.mrf.mxu0 }
 0x315   : > { %v582_v29 = vpop.f32.mrf.mxu0 }
 0x31a   : > { %v1637_v28 = vpop.f32.mrf.mxu1 }
 0x31b   : > { %v673_v23 = vadd.f32 %v1637_v28, %v1599_v27 }
 0x31c   : > { %v667_v22 = vpop.f32.mrf.mxu1 }
 0x31d   : > { %v668_v42 = vadd.f32 %v667_v22, %v582_v29 }
 0x32b   : > { %v1672_v30 = vpop.f32.mrf.mxu0  ;;  %v1710_v31 = vpop.f32.mrf.mxu1 }
 0x32c   : > { %v791_v38 = vadd.f32 %v1672_v30, %v663_v34 }
 0x32d   : > { %v771_v32 = vpop.f32.mrf.mxu0  ;;  %v889_v33 = vpop.f32.mrf.mxu1 }
 0x32e   : > { %v790_v39 = vadd.f32 %v771_v32, %v658_v37  ;;  %v909_v43 = vadd.f32 %v1710_v31, %v791_v38 }
 0x330   : > { %v908_v47 = vadd.f32 %v889_v33, %v790_v39 }
 0x331   : > { %v1675_v35 = vpop.f32.mrf.mxu0  ;;  %v1713_v36 = vpop.f32.mrf.mxu1 }
 0x332   : > { %v793_v44 = vadd.f32 %v1675_v35, %v673_v23 }
 0x333   : > { %v781_v40 = vpop.f32.mrf.mxu0  ;;  %v899_v41 = vpop.f32.mrf.mxu1 }
 0x334   : > { %v792_v48 = vadd.f32 %v781_v40, %v668_v42  ;;  %v911_v51 = vadd.f32 %v1713_v36, %v793_v44 }
 0x336   : > { %v910_v56 = vadd.f32 %v899_v41, %v792_v48 }
 0x34f   : > { %v1748_v45 = vpop.f32.mrf.mxu0  ;;  %v1786_v46 = vpop.f32.mrf.mxu1 }
 0x350   : > { %v1027_v49 = vadd.f32 %v1748_v45, %v909_v43 }
 0x351   : > { %v1007_v7 = vpop.f32.mrf.mxu0  ;;  %v1125_v50 = vpop.f32.mrf.mxu1 }
 0x352   : > { %v1145_v52 = vadd.f32 %v1786_v46, %v1027_v49  ;;  %v1026_v53 = vadd.f32 %v1007_v7, %v908_v47 }
 0x353   : > { %v1751_v54 = vpop.f32.mrf.mxu0  ;;  %v1789_v55 = vpop.f32.mrf.mxu1 }
 0x354   : > { %v1144_v57 = vadd.f32 %v1125_v50, %v1026_v53  ;;  %v1029_v58 = vadd.f32 %v1751_v54, %v911_v51  ;;  %v1149_v60 = vmul.f32 %v1145_v52, %v1145_v52 }
 0x355   : > { %v1017_v59 = vpop.f32.mrf.mxu0  ;;  %v1135_v0 = vpop.f32.mrf.mxu1 }
 0x356   : > { %v1148_v61 = vmul.f32 %v1144_v57, %v1144_v57  ;;  %v1147_v62 = vadd.f32 %v1789_v55, %v1029_v58  ;;  %v1028_v63 = vadd.f32 %v1017_v59, %v910_v56  ;;  %v1154_v3 = vsel %vm1152_vm0, %v1149_v60, 0.0 }
 0x358   : > { %v1153_v1 = vsel %vm1152_vm0, %v1148_v61, 0.0  ;;  %v1146_v2 = vadd.f32 %v1135_v0, %v1028_v63  ;;  %v1151_v4 = vmul.f32 %v1147_v62, %v1147_v62 }
 0x359   : > { %v1155_v6 = vadd.f32 %v1154_v3, %v1153_v1 }
 0x35a   : > { %v1150_v5 = vmul.f32 %v1146_v2, %v1146_v2  ;;  %v1158_v10 = vsel %vm1152_vm0, %v1151_v4, 0.0 }
 0x35c   : > { %v1156_v8 = vsel %vm1152_vm0, %v1150_v5, 0.0 }
 0x35d   : > { %v1157_v9 = vadd.f32 %v1156_v8, %v1155_v6 }
 0x35f   : > { %v1159_v11 = vadd.f32 %v1158_v10, %v1157_v9 }
 0x361   : > { %v1160_v12 = vrot.slane %v1159_v11, 4 }
 0x363   : > { %v1161_v13 = vadd.f32 %v1160_v12, %v1159_v11 }
 0x365   : > { %v1162_v14 = vrot.slane %v1161_v13, 2 }
 0x367   : > { %v1163_v15 = vadd.f32 %v1162_v14, %v1161_v13 }
 0x369   : > { %v1164_v16 = vrot.slane %v1163_v15, 1 }
 0x36b   : > { %v1165_v17 = vadd.f32 %v1164_v16, %v1163_v15 }
 0x36d   : > { %1167 = vst.msk [vmem:[%s217_s6] sm:$0x1] %vm1166_vm1, %v1165_v17 }
 0x36e   : > { %1856 = shalt.err (!%p1853_p3)
}
 0x36f   : > { %s1857_s14 = scalar_lea.hbm %s1179_s30, 16  ;;  %s1861_s17 = scalar_lea.hbm %s2471_s5, 32 }
 0x370   : > { %p1858_p4 = scmp.ne.s32.totalorder %s1179_s30, %s1857_s14  ;;  %p1862_p9 = scmp.lt.s32.totalorder %s1179_s30, %s2471_s5 }
 0x371   : > { %p1863_p10 = scmp.lt.s32.totalorder %s1861_s17, %s1857_s14 }
 0x372   : > { %p1859_p7 = pnand %p1858_p4, %p1980_p5 }
 0x373   : > { %p1864_p11 = por %p1863_p10, %p1862_p9 }
 0x374   : > { %p1860_p8 = pneg %p1859_p7 }
 0x376   : > { %p1865_p12 = pnand %p1864_p11, %p1860_p8 }
 0x378   : > { %1868 = shalt.err (!%p1865_p12)
}
 0x379   : > { %1790 = dma.vmem_to_hbm [thread:$0]  (%p1980_p5), %s1182_s7, 16, %s1179_s30, %s1169_s10  }
 0x37a PF: > { %p1796_p13 = scmp.ge.s32.totalorder %s1903_s21, 2  ;;  %s1193_s26 = sand.u32 1, %s1891_s18  }
 0x37b   : > { %s1194_s6 = scalar_lea.sflag [#allocation3], %s1193_s26 }
 0x37c   : > { %p1793_p0 = pnand %p1796_p13, %p1984_p6 }
 0x37e   : > { %p1794_p1 = pneg %p1793_p0 }
 0x380   : > { %1886 = dma.done.wait (%p1794_p1), %s1194_s6, 16  }
 0x381   : > { %1888 = vsyncadd (%p1794_p1), %s1194_s6, 4294967280  ;;  %p15_p2 = scmp.ge.s32.totalorder %s1967_s24, 4   ;;  %s2474_s18 = smov %s1895_s19 }
 0x382   : > { %s2475_s19 = smov %s1899_s20  ;;  %s2476_s20 = smov %s1978_s27 }
 0x383   : > { %s2477_s21 = smov %s1967_s24  ;;  %17 = sbr.rel (!%p15_p2) target bundleno = 3 (0x3), region = 80 }
 0x388   :  { %1198 = vsyncpa [#allocation3], 1 }
 0x389   :  { %1200 = vsyncpa [#allocation3 + $0x1], 1 }

</bundles_post_ra>
